<compile_context>
chip_gen: v7x
topology: tpu7x:2x2x1
jax: 0.10.0
libtpu: 0.0.40
codegen_flags: <defaults>
</compile_context>

<pallas_src>
import jax
import jax.numpy as jnp
from jax.experimental import pallas as pl
from jax.experimental.pallas import tpu as pltpu


def _make_rnn_kernel(seq_len, batch, input_size, hidden):
    def kernel(x_ref, params_ref, out_ref):
        x = x_ref[...]                                   # (S*B, I)
        p = params_ref[...]                              # (I+H+1, H)
        wih_t = p[0:input_size, :]                       # (I, H)  == W_ih^T
        whh_t = p[input_size:input_size + hidden, :]     # (H, H)  == W_hh^T
        b = p[input_size + hidden:input_size + hidden + 1, :]   # (1, H) fused bias

        # (1) One-shot input projection for ALL timesteps (no loop-carried
        #     dependence).  Done as VPU broadcast FMAs — the (8,4)@(4,4)
        #     matmul would waste a full MXU pass + FIFO latency.
        xp = b + x[:, 0:1] * wih_t[0:1, :]
        for i in range(1, input_size):
            xp = xp + x[:, i:i + 1] * wih_t[i:i + 1, :]  # (S*B, H), stays in vregs

        # (2) Serial recurrence, statically unrolled (seq_len is static & tiny).
        #     h @ W_hh^T as `hidden` broadcast FMAs; all intermediates stay in
        #     registers, output rows are collected and stored once at the end.
        h = jnp.zeros((batch, hidden), jnp.float32)
        rows = []
        for t in range(seq_len):
            rec = h[:, 0:1] * whh_t[0:1, :]
            for i in range(1, hidden):
                rec = rec + h[:, i:i + 1] * whh_t[i:i + 1, :]
            h = jnp.tanh(xp[t * batch:(t + 1) * batch, :] + rec)
            rows.append(h)

        # (3) Single full-block store (replaces seq_len masked partial stores).
        out_ref[...] = jnp.concatenate(rows, axis=0)

    return kernel


def rnn_forward(x, w_ih, w_hh, b_ih, b_hh):
    """x: (seq, batch, input_size); PyTorch weight conventions:
       w_ih: (hidden, input), w_hh: (hidden, hidden), b_*: (hidden,).
       Returns (seq*batch, hidden), i.e. out.view(-1, hidden_size)."""
    seq_len, batch, input_size = x.shape
    hidden = w_ih.shape[0]

    # Layout glue only: flatten time*batch; pack W_ih^T, W_hh^T and the fused
    # bias into a single params array so the kernel needs just 2 input DMAs.
    x2d = jnp.asarray(x, jnp.float32).reshape(seq_len * batch, input_size)
    wih_t = jnp.asarray(w_ih, jnp.float32).T                 # (input, hidden)
    whh_t = jnp.asarray(w_hh, jnp.float32).T                 # (hidden, hidden)
    b = (jnp.asarray(b_ih, jnp.float32)
         + jnp.asarray(b_hh, jnp.float32)).reshape(1, hidden)
    params = jnp.concatenate([wih_t, whh_t, b], axis=0)      # (I+H+1, H)

    kernel = _make_rnn_kernel(seq_len, batch, input_size, hidden)

    out = pl.pallas_call(
        kernel,
        out_shape=jax.ShapeDtypeStruct((seq_len * batch, hidden), jnp.float32),
        grid_spec=pltpu.PrefetchScalarGridSpec(
            num_scalar_prefetch=0,
            grid=(1,),  # single invocation: everything resident in VMEM
            in_specs=[
                pl.BlockSpec((seq_len * batch, input_size), lambda i: (0, 0)),
                pl.BlockSpec((input_size + hidden + 1, hidden), lambda i: (0, 0)),
            ],
            out_specs=pl.BlockSpec((seq_len * batch, hidden), lambda i: (0, 0)),
        ),
        compiler_params=pltpu.CompilerParams(
            dimension_semantics=("arbitrary",),
        ),
    )(x2d, params)

    return out  # already (seq*batch, hidden) == out.view(-1, hidden_size)


def _rnn_reference(x, w_ih, w_hh, b_ih, b_hh):
    """Pure-JAX reference (lax.scan) for correctness checking."""
    hidden = w_ih.shape[0]
    batch = x.shape[1]

    def step(h, x_t):
        h_new = jnp.tanh(x_t @ w_ih.T + b_ih + h @ w_hh.T + b_hh)
        return h_new, h_new

    h0 = jnp.zeros((batch, hidden), jnp.float32)
    _, outs = jax.lax.scan(step, h0, x)
    return outs.reshape(-1, hidden)


if __name__ == "__main__":
    # Module hyperparams (from the PyTorch script).
    batch_size = 1
    hidden_size = 4
    input_size = 4
    num_layers = 1  # single layer, matching num_Layers=1 in the spec
    seq_len = 8

    key = jax.random.PRNGKey(0)
    k_x, k_wih, k_whh, k_bih, k_bhh = jax.random.split(key, 5)

    # Deterministic "PyTorch-like" init: U(-1/sqrt(hidden), 1/sqrt(hidden)).
    bound = 1.0 / jnp.sqrt(hidden_size)
    x = jax.random.normal(k_x, (seq_len, batch_size, input_size), jnp.float32)
    w_ih = jax.random.uniform(k_wih, (hidden_size, input_size), jnp.float32, -bound, bound)
    w_hh = jax.random.uniform(k_whh, (hidden_size, hidden_size), jnp.float32, -bound, bound)
    b_ih = jax.random.uniform(k_bih, (hidden_size,), jnp.float32, -bound, bound)
    b_hh = jax.random.uniform(k_bhh, (hidden_size,), jnp.float32, -bound, bound)

    out = rnn_forward(x, w_ih, w_hh, b_ih, b_hh)
    out = jax.block_until_ready(out)

    ref = _rnn_reference(x, w_ih, w_hh, b_ih, b_hh)
    assert out.shape == (seq_len * batch_size, hidden_size), out.shape
    assert jnp.allclose(out, ref, atol=1e-5, rtol=1e-5), "mismatch vs reference"

    print("KERNEL_OK")
</pallas_src>

<mosaic_0001>
module attributes {stable_mosaic.version = 11 : i64} {
  func.func @kernel(%arg0: i32, %arg1: memref<8x4xf32, #tpu.memory_space<vmem>>, %arg2: memref<9x4xf32, #tpu.memory_space<vmem>>, %arg3: memref<8x4xf32, #tpu.memory_space<vmem>>) attributes {dimension_semantics = [#tpu.dimension_semantics<arbitrary>], iteration_bounds = array<i64: 1>, scalar_prefetch = 0 : i64, scratch_operands = 0 : i64, tpu.core_type = #tpu.core_type<tc>, window_params = [{pipeline_mode = #tpu.pipeline_mode<synchronous>, transform_indices = @transform_0, window_bounds = array<i64: 8, 4>}, {pipeline_mode = #tpu.pipeline_mode<synchronous>, transform_indices = @transform_1, window_bounds = array<i64: 9, 4>}, {pipeline_mode = #tpu.pipeline_mode<synchronous>, transform_indices = @transform_2, window_bounds = array<i64: 8, 4>}]} {
    %c0 = arith.constant 0 : index
    %c0_0 = arith.constant 0 : index
    %0 = vector.load %arg1[%c0, %c0_0] : memref<8x4xf32, #tpu.memory_space<vmem>>, vector<8x4xf32>
    %c0_1 = arith.constant 0 : index
    %c0_2 = arith.constant 0 : index
    %1 = vector.load %arg2[%c0_1, %c0_2] : memref<9x4xf32, #tpu.memory_space<vmem>>, vector<9x4xf32>
    %2 = vector.extract_strided_slice %1 {offsets = [0, 0], sizes = [4, 4], strides = [1, 1]} : vector<9x4xf32> to vector<4x4xf32>
    %3 = vector.extract_strided_slice %1 {offsets = [4, 0], sizes = [4, 4], strides = [1, 1]} : vector<9x4xf32> to vector<4x4xf32>
    %4 = vector.extract_strided_slice %1 {offsets = [8, 0], sizes = [1, 4], strides = [1, 1]} : vector<9x4xf32> to vector<1x4xf32>
    %5 = vector.extract_strided_slice %0 {offsets = [0, 0], sizes = [8, 1], strides = [1, 1]} : vector<8x4xf32> to vector<8x1xf32>
    %6 = vector.extract_strided_slice %2 {offsets = [0, 0], sizes = [1, 4], strides = [1, 1]} : vector<4x4xf32> to vector<1x4xf32>
    %7 = vector.broadcast %5 : vector<8x1xf32> to vector<8x4xf32>
    %8 = vector.broadcast %6 : vector<1x4xf32> to vector<8x4xf32>
    %9 = arith.mulf %7, %8 : vector<8x4xf32>
    %10 = vector.broadcast %4 : vector<1x4xf32> to vector<8x4xf32>
    %11 = arith.addf %10, %9 : vector<8x4xf32>
    %12 = vector.extract_strided_slice %0 {offsets = [0, 1], sizes = [8, 1], strides = [1, 1]} : vector<8x4xf32> to vector<8x1xf32>
    %13 = vector.extract_strided_slice %2 {offsets = [1, 0], sizes = [1, 4], strides = [1, 1]} : vector<4x4xf32> to vector<1x4xf32>
    %14 = vector.broadcast %12 : vector<8x1xf32> to vector<8x4xf32>
    %15 = vector.broadcast %13 : vector<1x4xf32> to vector<8x4xf32>
    %16 = arith.mulf %14, %15 : vector<8x4xf32>
    %17 = arith.addf %11, %16 : vector<8x4xf32>
    %18 = vector.extract_strided_slice %0 {offsets = [0, 2], sizes = [8, 1], strides = [1, 1]} : vector<8x4xf32> to vector<8x1xf32>
    %19 = vector.extract_strided_slice %2 {offsets = [2, 0], sizes = [1, 4], strides = [1, 1]} : vector<4x4xf32> to vector<1x4xf32>
    %20 = vector.broadcast %18 : vector<8x1xf32> to vector<8x4xf32>
    %21 = vector.broadcast %19 : vector<1x4xf32> to vector<8x4xf32>
    %22 = arith.mulf %20, %21 : vector<8x4xf32>
    %23 = arith.addf %17, %22 : vector<8x4xf32>
    %24 = vector.extract_strided_slice %0 {offsets = [0, 3], sizes = [8, 1], strides = [1, 1]} : vector<8x4xf32> to vector<8x1xf32>
    %25 = vector.extract_strided_slice %2 {offsets = [3, 0], sizes = [1, 4], strides = [1, 1]} : vector<4x4xf32> to vector<1x4xf32>
    %26 = vector.broadcast %24 : vector<8x1xf32> to vector<8x4xf32>
    %27 = vector.broadcast %25 : vector<1x4xf32> to vector<8x4xf32>
    %28 = arith.mulf %26, %27 : vector<8x4xf32>
    %29 = arith.addf %23, %28 : vector<8x4xf32>
    %cst = arith.constant 0.000000e+00 : f32
    %30 = vector.broadcast %cst : f32 to vector<1x4xf32>
    %31 = vector.extract_strided_slice %30 {offsets = [0, 0], sizes = [1, 1], strides = [1, 1]} : vector<1x4xf32> to vector<1x1xf32>
    %32 = vector.extract_strided_slice %3 {offsets = [0, 0], sizes = [1, 4], strides = [1, 1]} : vector<4x4xf32> to vector<1x4xf32>
    %33 = vector.broadcast %31 : vector<1x1xf32> to vector<1x4xf32>
    %34 = arith.mulf %33, %32 : vector<1x4xf32>
    %35 = vector.extract_strided_slice %30 {offsets = [0, 1], sizes = [1, 1], strides = [1, 1]} : vector<1x4xf32> to vector<1x1xf32>
    %36 = vector.extract_strided_slice %3 {offsets = [1, 0], sizes = [1, 4], strides = [1, 1]} : vector<4x4xf32> to vector<1x4xf32>
    %37 = vector.broadcast %35 : vector<1x1xf32> to vector<1x4xf32>
    %38 = arith.mulf %37, %36 : vector<1x4xf32>
    %39 = arith.addf %34, %38 : vector<1x4xf32>
    %40 = vector.extract_strided_slice %30 {offsets = [0, 2], sizes = [1, 1], strides = [1, 1]} : vector<1x4xf32> to vector<1x1xf32>
    %41 = vector.extract_strided_slice %3 {offsets = [2, 0], sizes = [1, 4], strides = [1, 1]} : vector<4x4xf32> to vector<1x4xf32>
    %42 = vector.broadcast %40 : vector<1x1xf32> to vector<1x4xf32>
    %43 = arith.mulf %42, %41 : vector<1x4xf32>
    %44 = arith.addf %39, %43 : vector<1x4xf32>
    %45 = vector.extract_strided_slice %30 {offsets = [0, 3], sizes = [1, 1], strides = [1, 1]} : vector<1x4xf32> to vector<1x1xf32>
    %46 = vector.extract_strided_slice %3 {offsets = [3, 0], sizes = [1, 4], strides = [1, 1]} : vector<4x4xf32> to vector<1x4xf32>
    %47 = vector.broadcast %45 : vector<1x1xf32> to vector<1x4xf32>
    %48 = arith.mulf %47, %46 : vector<1x4xf32>
    %49 = arith.addf %44, %48 : vector<1x4xf32>
    %50 = vector.extract_strided_slice %29 {offsets = [0, 0], sizes = [1, 4], strides = [1, 1]} : vector<8x4xf32> to vector<1x4xf32>
    %51 = arith.addf %50, %49 : vector<1x4xf32>
    %52 = math.tanh %51 : vector<1x4xf32>
    %53 = vector.extract_strided_slice %52 {offsets = [0, 0], sizes = [1, 1], strides = [1, 1]} : vector<1x4xf32> to vector<1x1xf32>
    %54 = vector.extract_strided_slice %3 {offsets = [0, 0], sizes = [1, 4], strides = [1, 1]} : vector<4x4xf32> to vector<1x4xf32>
    %55 = vector.broadcast %53 : vector<1x1xf32> to vector<1x4xf32>
    %56 = arith.mulf %55, %54 : vector<1x4xf32>
    %57 = vector.extract_strided_slice %52 {offsets = [0, 1], sizes = [1, 1], strides = [1, 1]} : vector<1x4xf32> to vector<1x1xf32>
    %58 = vector.extract_strided_slice %3 {offsets = [1, 0], sizes = [1, 4], strides = [1, 1]} : vector<4x4xf32> to vector<1x4xf32>
    %59 = vector.broadcast %57 : vector<1x1xf32> to vector<1x4xf32>
    %60 = arith.mulf %59, %58 : vector<1x4xf32>
    %61 = arith.addf %56, %60 : vector<1x4xf32>
    %62 = vector.extract_strided_slice %52 {offsets = [0, 2], sizes = [1, 1], strides = [1, 1]} : vector<1x4xf32> to vector<1x1xf32>
    %63 = vector.extract_strided_slice %3 {offsets = [2, 0], sizes = [1, 4], strides = [1, 1]} : vector<4x4xf32> to vector<1x4xf32>
    %64 = vector.broadcast %62 : vector<1x1xf32> to vector<1x4xf32>
    %65 = arith.mulf %64, %63 : vector<1x4xf32>
    %66 = arith.addf %61, %65 : vector<1x4xf32>
    %67 = vector.extract_strided_slice %52 {offsets = [0, 3], sizes = [1, 1], strides = [1, 1]} : vector<1x4xf32> to vector<1x1xf32>
    %68 = vector.extract_strided_slice %3 {offsets = [3, 0], sizes = [1, 4], strides = [1, 1]} : vector<4x4xf32> to vector<1x4xf32>
    %69 = vector.broadcast %67 : vector<1x1xf32> to vector<1x4xf32>
    %70 = arith.mulf %69, %68 : vector<1x4xf32>
    %71 = arith.addf %66, %70 : vector<1x4xf32>
    %72 = vector.extract_strided_slice %29 {offsets = [1, 0], sizes = [1, 4], strides = [1, 1]} : vector<8x4xf32> to vector<1x4xf32>
    %73 = arith.addf %72, %71 : vector<1x4xf32>
    %74 = math.tanh %73 : vector<1x4xf32>
    %75 = vector.extract_strided_slice %74 {offsets = [0, 0], sizes = [1, 1], strides = [1, 1]} : vector<1x4xf32> to vector<1x1xf32>
    %76 = vector.extract_strided_slice %3 {offsets = [0, 0], sizes = [1, 4], strides = [1, 1]} : vector<4x4xf32> to vector<1x4xf32>
    %77 = vector.broadcast %75 : vector<1x1xf32> to vector<1x4xf32>
    %78 = arith.mulf %77, %76 : vector<1x4xf32>
    %79 = vector.extract_strided_slice %74 {offsets = [0, 1], sizes = [1, 1], strides = [1, 1]} : vector<1x4xf32> to vector<1x1xf32>
    %80 = vector.extract_strided_slice %3 {offsets = [1, 0], sizes = [1, 4], strides = [1, 1]} : vector<4x4xf32> to vector<1x4xf32>
    %81 = vector.broadcast %79 : vector<1x1xf32> to vector<1x4xf32>
    %82 = arith.mulf %81, %80 : vector<1x4xf32>
    %83 = arith.addf %78, %82 : vector<1x4xf32>
    %84 = vector.extract_strided_slice %74 {offsets = [0, 2], sizes = [1, 1], strides = [1, 1]} : vector<1x4xf32> to vector<1x1xf32>
    %85 = vector.extract_strided_slice %3 {offsets = [2, 0], sizes = [1, 4], strides = [1, 1]} : vector<4x4xf32> to vector<1x4xf32>
    %86 = vector.broadcast %84 : vector<1x1xf32> to vector<1x4xf32>
    %87 = arith.mulf %86, %85 : vector<1x4xf32>
    %88 = arith.addf %83, %87 : vector<1x4xf32>
    %89 = vector.extract_strided_slice %74 {offsets = [0, 3], sizes = [1, 1], strides = [1, 1]} : vector<1x4xf32> to vector<1x1xf32>
    %90 = vector.extract_strided_slice %3 {offsets = [3, 0], sizes = [1, 4], strides = [1, 1]} : vector<4x4xf32> to vector<1x4xf32>
    %91 = vector.broadcast %89 : vector<1x1xf32> to vector<1x4xf32>
    %92 = arith.mulf %91, %90 : vector<1x4xf32>
    %93 = arith.addf %88, %92 : vector<1x4xf32>
    %94 = vector.extract_strided_slice %29 {offsets = [2, 0], sizes = [1, 4], strides = [1, 1]} : vector<8x4xf32> to vector<1x4xf32>
    %95 = arith.addf %94, %93 : vector<1x4xf32>
    %96 = math.tanh %95 : vector<1x4xf32>
    %97 = vector.extract_strided_slice %96 {offsets = [0, 0], sizes = [1, 1], strides = [1, 1]} : vector<1x4xf32> to vector<1x1xf32>
    %98 = vector.extract_strided_slice %3 {offsets = [0, 0], sizes = [1, 4], strides = [1, 1]} : vector<4x4xf32> to vector<1x4xf32>
    %99 = vector.broadcast %97 : vector<1x1xf32> to vector<1x4xf32>
    %100 = arith.mulf %99, %98 : vector<1x4xf32>
    %101 = vector.extract_strided_slice %96 {offsets = [0, 1], sizes = [1, 1], strides = [1, 1]} : vector<1x4xf32> to vector<1x1xf32>
    %102 = vector.extract_strided_slice %3 {offsets = [1, 0], sizes = [1, 4], strides = [1, 1]} : vector<4x4xf32> to vector<1x4xf32>
    %103 = vector.broadcast %101 : vector<1x1xf32> to vector<1x4xf32>
    %104 = arith.mulf %103, %102 : vector<1x4xf32>
    %105 = arith.addf %100, %104 : vector<1x4xf32>
    %106 = vector.extract_strided_slice %96 {offsets = [0, 2], sizes = [1, 1], strides = [1, 1]} : vector<1x4xf32> to vector<1x1xf32>
    %107 = vector.extract_strided_slice %3 {offsets = [2, 0], sizes = [1, 4], strides = [1, 1]} : vector<4x4xf32> to vector<1x4xf32>
    %108 = vector.broadcast %106 : vector<1x1xf32> to vector<1x4xf32>
    %109 = arith.mulf %108, %107 : vector<1x4xf32>
    %110 = arith.addf %105, %109 : vector<1x4xf32>
    %111 = vector.extract_strided_slice %96 {offsets = [0, 3], sizes = [1, 1], strides = [1, 1]} : vector<1x4xf32> to vector<1x1xf32>
    %112 = vector.extract_strided_slice %3 {offsets = [3, 0], sizes = [1, 4], strides = [1, 1]} : vector<4x4xf32> to vector<1x4xf32>
    %113 = vector.broadcast %111 : vector<1x1xf32> to vector<1x4xf32>
    %114 = arith.mulf %113, %112 : vector<1x4xf32>
    %115 = arith.addf %110, %114 : vector<1x4xf32>
    %116 = vector.extract_strided_slice %29 {offsets = [3, 0], sizes = [1, 4], strides = [1, 1]} : vector<8x4xf32> to vector<1x4xf32>
    %117 = arith.addf %116, %115 : vector<1x4xf32>
    %118 = math.tanh %117 : vector<1x4xf32>
    %119 = vector.extract_strided_slice %118 {offsets = [0, 0], sizes = [1, 1], strides = [1, 1]} : vector<1x4xf32> to vector<1x1xf32>
    %120 = vector.extract_strided_slice %3 {offsets = [0, 0], sizes = [1, 4], strides = [1, 1]} : vector<4x4xf32> to vector<1x4xf32>
    %121 = vector.broadcast %119 : vector<1x1xf32> to vector<1x4xf32>
    %122 = arith.mulf %121, %120 : vector<1x4xf32>
    %123 = vector.extract_strided_slice %118 {offsets = [0, 1], sizes = [1, 1], strides = [1, 1]} : vector<1x4xf32> to vector<1x1xf32>
    %124 = vector.extract_strided_slice %3 {offsets = [1, 0], sizes = [1, 4], strides = [1, 1]} : vector<4x4xf32> to vector<1x4xf32>
    %125 = vector.broadcast %123 : vector<1x1xf32> to vector<1x4xf32>
    %126 = arith.mulf %125, %124 : vector<1x4xf32>
    %127 = arith.addf %122, %126 : vector<1x4xf32>
    %128 = vector.extract_strided_slice %118 {offsets = [0, 2], sizes = [1, 1], strides = [1, 1]} : vector<1x4xf32> to vector<1x1xf32>
    %129 = vector.extract_strided_slice %3 {offsets = [2, 0], sizes = [1, 4], strides = [1, 1]} : vector<4x4xf32> to vector<1x4xf32>
    %130 = vector.broadcast %128 : vector<1x1xf32> to vector<1x4xf32>
    %131 = arith.mulf %130, %129 : vector<1x4xf32>
    %132 = arith.addf %127, %131 : vector<1x4xf32>
    %133 = vector.extract_strided_slice %118 {offsets = [0, 3], sizes = [1, 1], strides = [1, 1]} : vector<1x4xf32> to vector<1x1xf32>
    %134 = vector.extract_strided_slice %3 {offsets = [3, 0], sizes = [1, 4], strides = [1, 1]} : vector<4x4xf32> to vector<1x4xf32>
    %135 = vector.broadcast %133 : vector<1x1xf32> to vector<1x4xf32>
    %136 = arith.mulf %135, %134 : vector<1x4xf32>
    %137 = arith.addf %132, %136 : vector<1x4xf32>
    %138 = vector.extract_strided_slice %29 {offsets = [4, 0], sizes = [1, 4], strides = [1, 1]} : vector<8x4xf32> to vector<1x4xf32>
    %139 = arith.addf %138, %137 : vector<1x4xf32>
    %140 = math.tanh %139 : vector<1x4xf32>
    %141 = vector.extract_strided_slice %140 {offsets = [0, 0], sizes = [1, 1], strides = [1, 1]} : vector<1x4xf32> to vector<1x1xf32>
    %142 = vector.extract_strided_slice %3 {offsets = [0, 0], sizes = [1, 4], strides = [1, 1]} : vector<4x4xf32> to vector<1x4xf32>
    %143 = vector.broadcast %141 : vector<1x1xf32> to vector<1x4xf32>
    %144 = arith.mulf %143, %142 : vector<1x4xf32>
    %145 = vector.extract_strided_slice %140 {offsets = [0, 1], sizes = [1, 1], strides = [1, 1]} : vector<1x4xf32> to vector<1x1xf32>
    %146 = vector.extract_strided_slice %3 {offsets = [1, 0], sizes = [1, 4], strides = [1, 1]} : vector<4x4xf32> to vector<1x4xf32>
    %147 = vector.broadcast %145 : vector<1x1xf32> to vector<1x4xf32>
    %148 = arith.mulf %147, %146 : vector<1x4xf32>
    %149 = arith.addf %144, %148 : vector<1x4xf32>
    %150 = vector.extract_strided_slice %140 {offsets = [0, 2], sizes = [1, 1], strides = [1, 1]} : vector<1x4xf32> to vector<1x1xf32>
    %151 = vector.extract_strided_slice %3 {offsets = [2, 0], sizes = [1, 4], strides = [1, 1]} : vector<4x4xf32> to vector<1x4xf32>
    %152 = vector.broadcast %150 : vector<1x1xf32> to vector<1x4xf32>
    %153 = arith.mulf %152, %151 : vector<1x4xf32>
    %154 = arith.addf %149, %153 : vector<1x4xf32>
    %155 = vector.extract_strided_slice %140 {offsets = [0, 3], sizes = [1, 1], strides = [1, 1]} : vector<1x4xf32> to vector<1x1xf32>
    %156 = vector.extract_strided_slice %3 {offsets = [3, 0], sizes = [1, 4], strides = [1, 1]} : vector<4x4xf32> to vector<1x4xf32>
    %157 = vector.broadcast %155 : vector<1x1xf32> to vector<1x4xf32>
    %158 = arith.mulf %157, %156 : vector<1x4xf32>
    %159 = arith.addf %154, %158 : vector<1x4xf32>
    %160 = vector.extract_strided_slice %29 {offsets = [5, 0], sizes = [1, 4], strides = [1, 1]} : vector<8x4xf32> to vector<1x4xf32>
    %161 = arith.addf %160, %159 : vector<1x4xf32>
    %162 = math.tanh %161 : vector<1x4xf32>
    %163 = vector.extract_strided_slice %162 {offsets = [0, 0], sizes = [1, 1], strides = [1, 1]} : vector<1x4xf32> to vector<1x1xf32>
    %164 = vector.extract_strided_slice %3 {offsets = [0, 0], sizes = [1, 4], strides = [1, 1]} : vector<4x4xf32> to vector<1x4xf32>
    %165 = vector.broadcast %163 : vector<1x1xf32> to vector<1x4xf32>
    %166 = arith.mulf %165, %164 : vector<1x4xf32>
    %167 = vector.extract_strided_slice %162 {offsets = [0, 1], sizes = [1, 1], strides = [1, 1]} : vector<1x4xf32> to vector<1x1xf32>
    %168 = vector.extract_strided_slice %3 {offsets = [1, 0], sizes = [1, 4], strides = [1, 1]} : vector<4x4xf32> to vector<1x4xf32>
    %169 = vector.broadcast %167 : vector<1x1xf32> to vector<1x4xf32>
    %170 = arith.mulf %169, %168 : vector<1x4xf32>
    %171 = arith.addf %166, %170 : vector<1x4xf32>
    %172 = vector.extract_strided_slice %162 {offsets = [0, 2], sizes = [1, 1], strides = [1, 1]} : vector<1x4xf32> to vector<1x1xf32>
    %173 = vector.extract_strided_slice %3 {offsets = [2, 0], sizes = [1, 4], strides = [1, 1]} : vector<4x4xf32> to vector<1x4xf32>
    %174 = vector.broadcast %172 : vector<1x1xf32> to vector<1x4xf32>
    %175 = arith.mulf %174, %173 : vector<1x4xf32>
    %176 = arith.addf %171, %175 : vector<1x4xf32>
    %177 = vector.extract_strided_slice %162 {offsets = [0, 3], sizes = [1, 1], strides = [1, 1]} : vector<1x4xf32> to vector<1x1xf32>
    %178 = vector.extract_strided_slice %3 {offsets = [3, 0], sizes = [1, 4], strides = [1, 1]} : vector<4x4xf32> to vector<1x4xf32>
    %179 = vector.broadcast %177 : vector<1x1xf32> to vector<1x4xf32>
    %180 = arith.mulf %179, %178 : vector<1x4xf32>
    %181 = arith.addf %176, %180 : vector<1x4xf32>
    %182 = vector.extract_strided_slice %29 {offsets = [6, 0], sizes = [1, 4], strides = [1, 1]} : vector<8x4xf32> to vector<1x4xf32>
    %183 = arith.addf %182, %181 : vector<1x4xf32>
    %184 = math.tanh %183 : vector<1x4xf32>
    %185 = vector.extract_strided_slice %184 {offsets = [0, 0], sizes = [1, 1], strides = [1, 1]} : vector<1x4xf32> to vector<1x1xf32>
    %186 = vector.extract_strided_slice %3 {offsets = [0, 0], sizes = [1, 4], strides = [1, 1]} : vector<4x4xf32> to vector<1x4xf32>
    %187 = vector.broadcast %185 : vector<1x1xf32> to vector<1x4xf32>
    %188 = arith.mulf %187, %186 : vector<1x4xf32>
    %189 = vector.extract_strided_slice %184 {offsets = [0, 1], sizes = [1, 1], strides = [1, 1]} : vector<1x4xf32> to vector<1x1xf32>
    %190 = vector.extract_strided_slice %3 {offsets = [1, 0], sizes = [1, 4], strides = [1, 1]} : vector<4x4xf32> to vector<1x4xf32>
    %191 = vector.broadcast %189 : vector<1x1xf32> to vector<1x4xf32>
    %192 = arith.mulf %191, %190 : vector<1x4xf32>
    %193 = arith.addf %188, %192 : vector<1x4xf32>
    %194 = vector.extract_strided_slice %184 {offsets = [0, 2], sizes = [1, 1], strides = [1, 1]} : vector<1x4xf32> to vector<1x1xf32>
    %195 = vector.extract_strided_slice %3 {offsets = [2, 0], sizes = [1, 4], strides = [1, 1]} : vector<4x4xf32> to vector<1x4xf32>
    %196 = vector.broadcast %194 : vector<1x1xf32> to vector<1x4xf32>
    %197 = arith.mulf %196, %195 : vector<1x4xf32>
    %198 = arith.addf %193, %197 : vector<1x4xf32>
    %199 = vector.extract_strided_slice %184 {offsets = [0, 3], sizes = [1, 1], strides = [1, 1]} : vector<1x4xf32> to vector<1x1xf32>
    %200 = vector.extract_strided_slice %3 {offsets = [3, 0], sizes = [1, 4], strides = [1, 1]} : vector<4x4xf32> to vector<1x4xf32>
    %201 = vector.broadcast %199 : vector<1x1xf32> to vector<1x4xf32>
    %202 = arith.mulf %201, %200 : vector<1x4xf32>
    %203 = arith.addf %198, %202 : vector<1x4xf32>
    %204 = vector.extract_strided_slice %29 {offsets = [7, 0], sizes = [1, 4], strides = [1, 1]} : vector<8x4xf32> to vector<1x4xf32>
    %205 = arith.addf %204, %203 : vector<1x4xf32>
    %206 = math.tanh %205 : vector<1x4xf32>
    %207 = tpu.concatenate %52, %74, %96, %118, %140, %162, %184, %206 in 0 : vector<1x4xf32>, vector<1x4xf32>, vector<1x4xf32>, vector<1x4xf32>, vector<1x4xf32>, vector<1x4xf32>, vector<1x4xf32>, vector<1x4xf32> -> vector<8x4xf32>
    %c0_3 = arith.constant 0 : index
    %c0_4 = arith.constant 0 : index
    %208 = vector.load %arg3[%c0_3, %c0_4] : memref<8x4xf32, #tpu.memory_space<vmem>>, vector<8x4xf32>
    tpu.vector_store %arg3[%c0_3, %c0_4], %207 {strides = array<i32>} : memref<8x4xf32, #tpu.memory_space<vmem>>, vector<8x4xf32>,
    return
  }
  func.func @transform_0(%arg0: i32) -> (i32, i32) {
    %c0_i32 = arith.constant 0 : i32
    %c0_i32_0 = arith.constant 0 : i32
    %c0_i32_1 = arith.constant 0 : i32
    return %c0_i32, %c0_i32_0 : i32, i32
  }
  func.func @transform_1(%arg0: i32) -> (i32, i32) {
    %c0_i32 = arith.constant 0 : i32
    %c0_i32_0 = arith.constant 0 : i32
    %c0_i32_1 = arith.constant 0 : i32
    return %c0_i32, %c0_i32_0 : i32, i32
  }
  func.func @transform_2(%arg0: i32) -> (i32, i32) {
    %c0_i32 = arith.constant 0 : i32
    %c0_i32_0 = arith.constant 0 : i32
    %c0_i32_1 = arith.constant 0 : i32
    return %c0_i32, %c0_i32_0 : i32, i32
  }
}

</mosaic_0001>

<bundles_post_ra>
// kernel: tpu_custom_call.1
= control target key start
LH: loop header
LB: loop body
LE: loop exit
PB: predicated region body
PF: predicated region fallthrough
CT: control target
= control target key end

     0   :  { %v365_v0 = vmov 0   ;;  %v366_v2 = vmov 2   ;;  %v367_v3 = vmov 1   ;;  %v368_v4 = vmov 3   ;;  %s493_s0 = inlined_call_operand.vmem [shape: f32[8,4], index: 0, kind: input, shape index: {}]   ;;  %s494_s1 = inlined_call_operand.vmem [shape: f32[9,4], index: 1, kind: input, shape index: {}]   ;;  %s495_s2 = inlined_call_operand.vmem [shape: f32[8,4], index: 2, kind: output, shape index: {}]  }
   0x1   :  { %318 = vset.pattern.permute.xlu0 %v365_v0  ;;  %v11_v1 = vld [vmem:[%s493_s0] sm:$0xff]  ;;  %320 = vset.pattern.permute.xlu1 %v366_v2  ;;  %v19_v5 = vlaneseq  ;;  %v313_v23 = vld [vmem:[%s494_s1 + $0x8] ss:$0 sm:$0xff]  ;;  %vm293_vm0 = vcmask 1040384   ;;  %vm295_vm1 = vcmask 1041408   ;;  %vm297_vm2 = vcmask 1042432  }
   0x2   :  { %16 = vperm.xlu0 %318, %v11_v1   ;;  %40 = vperm.xlu1 %320, %v11_v1   ;;  %v395_v6 = vld [vmem:[%s494_s1] sm:$0xff]  ;;  %vm299_vm3 = vcmask 1043456   ;;  %vm301_vm4 = vcmask 1044480   ;;  %vm303_vm5 = vcmask 1045504   ;;  %vm305_vm6 = vcmask 1046528  }
   0x3   :  { %v20_v7 = vshrl.u32 %v19_v5, 7  ;;  %v59_v8 = vmul.f32 0.0, %v395_v6  ;;  %v413_v39 = vrot.slane %v395_v6, 5  ;;  %v416_v40 = vrot.slane %v395_v6, 4 }
   0x4   :  { %v421_v45 = vrot.slane %v395_v6, 6  ;;  %v424_v46 = vrot.slane %v395_v6, 7  ;;  %v434_v58 = vrot.slane %v395_v6, 3  ;;  %vm307_vm7 = vcmask 31744  }
   0x5   :  { %v21_v9 = vsub.s32 0, %v20_v7  ;;  %v61_v10 = vrot.slane %v59_v8, 1  ;;  %v35_v12 = vsub.s32 1, %v20_v7  ;;  %v64_v14 = vrot.slane %v59_v8, 2 }
   0x6   :  { %319 = vset.pattern.permute.xlu0 %v367_v3  ;;  %321 = vset.pattern.permute.xlu1 %v368_v4  ;;  %v45_v16 = vsub.s32 2, %v20_v7  ;;  %v55_v18 = vsub.s32 3, %v20_v7  ;;  %v67_v22 = vrot.slane %v59_v8, 3 }
   0x7   :  { %30 = vperm.xlu0 %319, %v11_v1   ;;  %50 = vperm.xlu1 %321, %v11_v1   ;;  %v22_v11 = vrot.slane %v395_v6, %v21_v9  ;;  %v63_v13 = vadd.f32 %v61_v10, %v59_v8  ;;  %v36_v20 = vrot.slane %v395_v6, %v35_v12 }
   0x8   :  { %v46_v24 = vrot.slane %v395_v6, %v45_v16  ;;  %v56_v25 = vrot.slane %v395_v6, %v55_v18  ;;  %v446_v16 = vrot.slane %v395_v6, 2 }
   0x9   :  { %v66_v21 = vadd.f32 %v64_v14, %v63_v13 }
   0xb   :  { %322 = vset.pattern.permute.xlu1 %v365_v0  ;;  %v69_v30 = vadd.f32 %v67_v22, %v66_v21 }
   0xd   :  { %v71_v34 = vrot.slane %v69_v30, 4 }
  0x81   :  { %v17_v15 = vpop.permute.xlu0 %16  ;;  %v41_v17 = vpop.permute.xlu1 %40 }
  0x82   :  { %v23_v19 = vmul.f32 %v22_v11, %v17_v15  ;;  %v47_v31 = vmul.f32 %v46_v24, %v41_v17 }
  0x84   :  { %v28_v28 = vadd.f32 %v313_v23, %v23_v19 }
  0x86   :  { %v31_v26 = vpop.permute.xlu0 %30  ;;  %v51_v27 = vpop.permute.xlu1 %50 }
  0x87   :  { %v37_v29 = vmul.f32 %v36_v20, %v31_v26  ;;  %v57_v33 = vmul.f32 %v56_v25, %v51_v27 }
  0x89   :  { %v38_v32 = vadd.f32 %v37_v29, %v28_v28 }
  0x8b   :  { %v48_v35 = vadd.f32 %v47_v31, %v38_v32  ;;  %v458_v31 = vrot.slane %v395_v6, 1 }
  0x8d   :  { %v405_v36 = vadd.f32 %v57_v33, %v48_v35 }
  0x8f   :  { %v73_v37 = vadd.f32 %v71_v34, %v405_v36 }
  0x91   :  { %349 = vtanh.f32 %v73_v37 }
  0x9b   :  { %v350_v38 = vpop.eup %349 }
  0x9c   :  { %85 = vperm.xlu0 %319, %v350_v38   ;;  %77 = vperm.xlu1 %322, %v350_v38  }
  0xa0   :  { %324 = vset.pattern.permute.xlu0 %v368_v4  ;;  %323 = vset.pattern.permute.xlu1 %v366_v2 }
  0xa1   :  { %101 = vperm.xlu0 %324, %v350_v38   ;;  %93 = vperm.xlu1 %323, %v350_v38  }
  0xa5   :  { %327 = vset.pattern.permute.xlu0 %v366_v2  ;;  %325 = vset.pattern.permute.xlu1 %v365_v0 }
 0x11b   :  { %v86_v41 = vpop.permute.xlu0 %85  ;;  %v78_v42 = vpop.permute.xlu1 %77 }
 0x11c   :  { %v90_v43 = vmul.f32 %v413_v39, %v86_v41  ;;  %v83_v44 = vmul.f32 %v416_v40, %v78_v42 }
 0x11e   :  { %v91_v49 = vadd.f32 %v90_v43, %v83_v44 }
 0x120   :  { %v102_v47 = vpop.permute.xlu0 %101  ;;  %v94_v48 = vpop.permute.xlu1 %93 }
 0x121   :  { %v98_v50 = vmul.f32 %v421_v45, %v94_v48  ;;  %v106_v51 = vmul.f32 %v424_v46, %v102_v47 }
 0x123   :  { %v99_v52 = vadd.f32 %v98_v50, %v91_v49 }
 0x125   :  { %v107_v53 = vadd.f32 %v106_v51, %v99_v52 }
 0x127   :  { %v109_v54 = vrot.slane %v107_v53, 7 }
 0x129   :  { %v111_v55 = vadd.f32 %v109_v54, %v405_v36 }
 0x12b   :  { %351 = vtanh.f32 %v111_v55 }
 0x135   :  { %v352_v56 = vpop.eup %351 }
 0x136   :  { %128 = vperm.xlu0 %327, %v352_v56   ;;  %115 = vperm.xlu1 %325, %v352_v56   ;;  %v294_v13 = vsel %vm293_vm0, %v350_v38, %v352_v56 }
 0x13a   :  { %326 = vset.pattern.permute.xlu1 %v367_v3  ;;  %330 = vset.pattern.permute.xlu0 %v367_v3 }
 0x13b   :  { %122 = vperm.xlu1 %326, %v352_v56  }
 0x13f   :  { %328 = vset.pattern.permute.xlu1 %v368_v4 }
 0x140   :  { %134 = vperm.xlu1 %328, %v352_v56  }
 0x144   :  { %329 = vset.pattern.permute.xlu1 %v365_v0 }
 0x1b5   :  { %v116_v57 = vpop.permute.xlu1 %115  ;;  %v129_v59 = vpop.permute.xlu0 %128 }
 0x1b6   :  { %v120_v61 = vmul.f32 %v434_v58, %v116_v57  ;;  %v131_v63 = vmul.f32 %v129_v59, %v413_v39 }
 0x1ba   :  { %v123_v60 = vpop.permute.xlu1 %122 }
 0x1bb   :  { %v125_v62 = vmul.f32 %v123_v60, %v416_v40 }
 0x1bd   :  { %v126_v1 = vadd.f32 %v125_v62, %v120_v61 }
 0x1bf   :  { %v132_v5 = vadd.f32 %v131_v63, %v126_v1  ;;  %v135_v7 = vpop.permute.xlu1 %134 }
 0x1c0   :  { %v137_v8 = vmul.f32 %v135_v7, %v421_v45 }
 0x1c2   :  { %v138_v9 = vadd.f32 %v137_v8, %v132_v5 }
 0x1c4   :  { %v140_v10 = vrot.slane %v138_v9, 7 }
 0x1c6   :  { %v142_v11 = vadd.f32 %v140_v10, %v405_v36 }
 0x1c8   :  { %353 = vtanh.f32 %v142_v11 }
 0x1d2   :  { %v354_v12 = vpop.eup %353 }
 0x1d3   :  { %153 = vperm.xlu0 %330, %v354_v12   ;;  %146 = vperm.xlu1 %329, %v354_v12   ;;  %v296_v14 = vsel %vm295_vm1, %v294_v13, %v354_v12 }
 0x1d7   :  { %331 = vset.pattern.permute.xlu1 %v366_v2  ;;  %333 = vset.pattern.permute.xlu0 %v365_v0 }
 0x1d8   :  { %159 = vperm.xlu1 %331, %v354_v12  }
 0x1dc   :  { %332 = vset.pattern.permute.xlu1 %v368_v4 }
 0x1dd   :  { %165 = vperm.xlu1 %332, %v354_v12  }
 0x1e1   :  { %334 = vset.pattern.permute.xlu1 %v367_v3 }
 0x252   :  { %v147_v15 = vpop.permute.xlu1 %146  ;;  %v154_v17 = vpop.permute.xlu0 %153 }
 0x253   :  { %v156_v18 = vmul.f32 %v154_v17, %v434_v58  ;;  %v151_v19 = vmul.f32 %v446_v16, %v147_v15 }
 0x255   :  { %v157_v22 = vadd.f32 %v156_v18, %v151_v19 }
 0x257   :  { %v160_v20 = vpop.permute.xlu1 %159 }
 0x258   :  { %v162_v21 = vmul.f32 %v160_v20, %v416_v40 }
 0x25a   :  { %v163_v24 = vadd.f32 %v162_v21, %v157_v22 }
 0x25c   :  { %v166_v23 = vpop.permute.xlu1 %165 }
 0x25d   :  { %v168_v25 = vmul.f32 %v166_v23, %v413_v39 }
 0x25f   :  { %v169_v26 = vadd.f32 %v168_v25, %v163_v24 }
 0x261   :  { %v171_v27 = vrot.slane %v169_v26, 7 }
 0x263   :  { %v173_v28 = vadd.f32 %v171_v27, %v405_v36 }
 0x265   :  { %355 = vtanh.f32 %v173_v28 }
 0x26f   :  { %v356_v29 = vpop.eup %355 }
 0x270   :  { %184 = vperm.xlu1 %334, %v356_v29   ;;  %177 = vperm.xlu0 %333, %v356_v29   ;;  %v298_v30 = vsel %vm297_vm2, %v296_v14, %v356_v29 }
 0x274   :  { %335 = vset.pattern.permute.xlu1 %v366_v2  ;;  %336 = vset.pattern.permute.xlu0 %v368_v4 }
 0x275   :  { %190 = vperm.xlu1 %335, %v356_v29   ;;  %196 = vperm.xlu0 %336, %v356_v29  }
 0x279   :  { %337 = vset.pattern.permute.xlu1 %v365_v0  ;;  %339 = vset.pattern.permute.xlu0 %v366_v2 }
 0x2ef   :  { %v185_v32 = vpop.permute.xlu1 %184  ;;  %v178_v33 = vpop.permute.xlu0 %177 }
 0x2f0   :  { %v187_v34 = vmul.f32 %v185_v32, %v446_v16  ;;  %v182_v35 = vmul.f32 %v458_v31, %v178_v33 }
 0x2f2   :  { %v188_v39 = vadd.f32 %v187_v34, %v182_v35 }
 0x2f4   :  { %v191_v37 = vpop.permute.xlu1 %190  ;;  %v197_v38 = vpop.permute.xlu0 %196 }
 0x2f5   :  { %v193_v41 = vmul.f32 %v191_v37, %v434_v58  ;;  %v199_v43 = vmul.f32 %v197_v38, %v416_v40 }
 0x2f7   :  { %v194_v42 = vadd.f32 %v193_v41, %v188_v39 }
 0x2f9   :  { %v200_v44 = vadd.f32 %v199_v43, %v194_v42 }
 0x2fb   :  { %v202_v47 = vrot.slane %v200_v44, 7 }
 0x2fd   :  { %v204_v48 = vadd.f32 %v202_v47, %v405_v36 }
 0x2ff   :  { %357 = vtanh.f32 %v204_v48 }
 0x309   :  { %v358_v49 = vpop.eup %357 }
 0x30a   :  { %219 = vperm.xlu0 %339, %v358_v49   ;;  %208 = vperm.xlu1 %337, %v358_v49   ;;  %v300_v50 = vsel %vm299_vm3, %v298_v30, %v358_v49 }
 0x30e   :  { %338 = vset.pattern.permute.xlu1 %v367_v3  ;;  %342 = vset.pattern.permute.xlu0 %v367_v3 }
 0x30f   :  { %213 = vperm.xlu1 %338, %v358_v49  }
 0x313   :  { %340 = vset.pattern.permute.xlu1 %v368_v4 }
 0x314   :  { %225 = vperm.xlu1 %340, %v358_v49  }
 0x318   :  { %341 = vset.pattern.permute.xlu1 %v365_v0 }
 0x389   :  { %v209_v40 = vpop.permute.xlu1 %208  ;;  %v220_v51 = vpop.permute.xlu0 %219 }
 0x38a   :  { %v211_v53 = vmul.f32 %v209_v40, %v395_v6  ;;  %v222_v55 = vmul.f32 %v220_v51, %v446_v16 }
 0x38e   :  { %v214_v52 = vpop.permute.xlu1 %213 }
 0x38f   :  { %v216_v54 = vmul.f32 %v214_v52, %v458_v31 }
 0x391   :  { %v217_v56 = vadd.f32 %v216_v54, %v211_v53 }
 0x393   :  { %v223_v57 = vadd.f32 %v222_v55, %v217_v56  ;;  %v226_v59 = vpop.permute.xlu1 %225 }
 0x394   :  { %v228_v60 = vmul.f32 %v226_v59, %v434_v58 }
 0x396   :  { %v229_v61 = vadd.f32 %v228_v60, %v223_v57 }
 0x398   :  { %v231_v62 = vrot.slane %v229_v61, 7 }
 0x39a   :  { %v233_v63 = vadd.f32 %v231_v62, %v405_v36 }
 0x39c   :  { %359 = vtanh.f32 %v233_v63 }
 0x3a6   :  { %v360_v1 = vpop.eup %359 }
 0x3a7   :  { %242 = vperm.xlu0 %342, %v360_v1   ;;  %237 = vperm.xlu1 %341, %v360_v1   ;;  %v302_v5 = vsel %vm301_vm4, %v300_v50, %v360_v1 }
 0x3ab   :  { %343 = vset.pattern.permute.xlu1 %v366_v2  ;;  %345 = vset.pattern.permute.xlu0 %v365_v0 }
 0x3ac   :  { %248 = vperm.xlu1 %343, %v360_v1  }
 0x3b0   :  { %344 = vset.pattern.permute.xlu1 %v368_v4 }
 0x3b1   :  { %254 = vperm.xlu1 %344, %v360_v1  }
 0x3b5   :  { %346 = vset.pattern.permute.xlu1 %v367_v3 }
 0x426   :  { %v238_v58 = vpop.permute.xlu1 %237  ;;  %v243_v7 = vpop.permute.xlu0 %242 }
 0x427   :  { %v245_v8 = vmul.f32 %v243_v7, %v395_v6  ;;  %v240_v9 = vmul.f32 %v238_v58, %v424_v46 }
 0x429   :  { %v246_v12 = vadd.f32 %v245_v8, %v240_v9 }
 0x42b   :  { %v249_v10 = vpop.permute.xlu1 %248 }
 0x42c   :  { %v251_v11 = vmul.f32 %v249_v10, %v458_v31 }
 0x42e   :  { %v252_v14 = vadd.f32 %v251_v11, %v246_v12 }
 0x430   :  { %v255_v13 = vpop.permute.xlu1 %254 }
 0x431   :  { %v257_v0 = vmul.f32 %v255_v13, %v446_v16 }
 0x433   :  { %v258_v15 = vadd.f32 %v257_v0, %v252_v14 }
 0x435   :  { %v260_v17 = vrot.slane %v258_v15, 7 }
 0x437   :  { %v262_v18 = vadd.f32 %v260_v17, %v405_v36 }
 0x439   :  { %361 = vtanh.f32 %v262_v18 }
 0x443   :  { %v362_v3 = vpop.eup %361 }
 0x444   :  { %271 = vperm.xlu1 %346, %v362_v3   ;;  %266 = vperm.xlu0 %345, %v362_v3   ;;  %v304_v19 = vsel %vm303_vm5, %v302_v5, %v362_v3 }
 0x448   :  { %347 = vset.pattern.permute.xlu1 %v366_v2  ;;  %348 = vset.pattern.permute.xlu0 %v368_v4 }
 0x449   :  { %277 = vperm.xlu1 %347, %v362_v3   ;;  %283 = vperm.xlu0 %348, %v362_v3  }
 0x4c3   :  { %v272_v20 = vpop.permute.xlu1 %271  ;;  %v267_v21 = vpop.permute.xlu0 %266 }
 0x4c4   :  { %v274_v16 = vmul.f32 %v272_v20, %v424_v46  ;;  %v269_v22 = vmul.f32 %v267_v21, %v421_v45 }
 0x4c6   :  { %v275_v25 = vadd.f32 %v274_v16, %v269_v22 }
 0x4c8   :  { %v278_v23 = vpop.permute.xlu1 %277  ;;  %v284_v24 = vpop.permute.xlu0 %283 }
 0x4c9   :  { %v280_v26 = vmul.f32 %v278_v23, %v395_v6  ;;  %v286_v28 = vmul.f32 %v284_v24, %v458_v31 }
 0x4cb   :  { %v281_v27 = vadd.f32 %v280_v26, %v275_v25 }
 0x4cd   :  { %v287_v29 = vadd.f32 %v286_v28, %v281_v27 }
 0x4cf   :  { %v289_v2 = vrot.slane %v287_v29, 7 }
 0x4d1   :  { %v291_v4 = vadd.f32 %v289_v2, %v405_v36 }
 0x4d3   :  { %363 = vtanh.f32 %v291_v4 }
 0x4dd   :  { %v364_v30 = vpop.eup %363 }
 0x4de   :  { %v306_v32 = vsel %vm305_vm6, %v304_v19, %v364_v30 }
 0x4df   :  { %308 = vst.msk [vmem:[%s495_s2] sm:$0xff] %vm307_vm7, %v306_v32 }

</bundles_post_ra>
